<compile_context>
chip_gen: v7x
topology: tpu7x:2x2x1
jax: 0.10.0
libtpu: 0.0.40
codegen_flags: <defaults>
</compile_context>

<pallas_src>
import functools

import jax
import jax.numpy as jnp
from jax.experimental import pallas as pl
from jax.experimental.pallas import tpu as pltpu


# --------------------------- kernels ---------------------------------------
def gat_project_kernel(x_ref, w_ref, asrc_bdt_ref, xw_ref, asrct_ref):
    """Per dst-row tile: xW (stored bf16) + f32 per-head src attention logits."""
    xw = jnp.dot(x_ref[...], w_ref[...], preferred_element_type=jnp.float32)
    xw_ref[...] = xw.astype(jnp.bfloat16)                          # [tile, H*f_p]
    # alpha_srcT[h, j] = <xW_j (head h), att_src_h>  (f32 logits, stored [H, N]
    # so the attention kernel broadcasts it as a lane-dense [1, N] row).
    asrct_ref[...] = jax.lax.dot_general(
        asrc_bdt_ref[...], xw, (((1,), (1,)), ((), ())),
        preferred_element_type=jnp.float32)                        # [H, tile]


def _gat_attend_tile(heads, fo_p, tile, adj_ref, xw_ref, adst_bd_ref, asrct_ref):
    """Masked multi-head attention + aggregation for one dst-row tile."""
    # alpha_dst for this tile: recomputed from the resident bf16 xW (tiny
    # matmul) instead of streaming a lane-sparse [N, H] array from HBM.
    row0 = pl.multiple_of(pl.program_id(0) * tile, tile)
    xw_tile = xw_ref[pl.ds(row0, tile), :]                         # [tile, H*fo_p] bf16
    adst = jnp.dot(xw_tile, adst_bd_ref[...],
                   preferred_element_type=jnp.float32)             # [tile, H] f32
    # 0/1 edge mask, hoisted out of the head loop (int8 adj -> compare > 0).
    mask = (adj_ref[...] > 0).astype(jnp.float32)                  # [tile, N]
    outs = []
    for h in range(heads):
        # s[i, j] = LeakyReLU(<a_dst, xW_i> + <a_src, xW_j>)
        s = adst[:, h:h + 1] + asrct_ref[h:h + 1, :]               # [tile, N] f32
        s = jnp.where(s >= 0.0, s, 0.2 * s)                        # LeakyReLU(0.2)
        # Multiplicative mask after exp (no -1e30 sentinel, max over unmasked
        # s).  Self-loops guarantee every dst row has >= 1 edge.
        e = jnp.exp(s - jnp.max(s, axis=-1, keepdims=True)) * mask
        inv = pl.reciprocal(jnp.sum(e, axis=-1, keepdims=True), approx=True)
        attn = (e * inv).astype(jnp.bfloat16)                      # softmax over src
        # TODO(synk): GATConv dropout(p=0.2) on attn is training-only; eval = no-op.
        outs.append(jnp.dot(attn, xw_ref[:, h * fo_p:(h + 1) * fo_p],
                            preferred_element_type=jnp.float32))   # [tile, fo_p]
    return jnp.concatenate(outs, axis=-1)                          # [tile, H*fo_p]


def gat_layer_kernel(heads, fo_p, tile,
                     adj_ref, xw_ref, adst_bd_ref, asrct_ref, b_ref, out_ref):
    agg = _gat_attend_tile(heads, fo_p, tile,
                           adj_ref, xw_ref, adst_bd_ref, asrct_ref)
    out_ref[...] = jnp.maximum(agg + b_ref[...], 0.0)              # relu(conv1(x))


def gat_layer_res_kernel(heads, fo_p, tile,
                         adj_ref, xw_ref, adst_bd_ref, asrct_ref, b_ref,
                         xres_ref, fcw_ref, fcb_ref, out_ref):
    agg = _gat_attend_tile(heads, fo_p, tile,
                           adj_ref, xw_ref, adst_bd_ref, asrct_ref)
    res = jnp.dot(xres_ref[...], fcw_ref[...],
                  preferred_element_type=jnp.float32) + fcb_ref[...]
    out_ref[...] = jnp.maximum(agg + b_ref[...] + res, 0.0)        # relu(convN + fc(x))


# --------------------------- VMEM budgeting ---------------------------------
def _attn_vmem_bytes(n, tile, hfp, heads, fin):
    resident = n * hfp * 2                     # xW (bf16, resident)
    resident += heads * n * 4                  # alpha_srcT (f32, resident)
    resident += hfp * heads * 2 + hfp * 4      # adst_bd (bf16) + bias (f32)
    streamed = 2 * (tile * n * 1 + tile * hfp * 4)   # int8 adj in + f32 out, 2 bufs
    if fin:
        resident += fin * hfp * 4 + hfp * 4    # fc weight + fc bias
        streamed += 2 * tile * fin * 4         # residual x tile
    temps = 16 * tile * n                      # ~4 live f32 [tile, N] temporaries
    return resident + streamed + temps


def _proj_vmem_bytes(tile, fin, hfp, heads):
    resident = fin * hfp * 4 + heads * hfp * 4
    streamed = 2 * (tile * fin * 4 + tile * hfp * 2 + heads * tile * 4)
    temps = 2 * tile * hfp * 4
    return resident + streamed + temps


def _vmem_limit(est_bytes):
    # Generous headroom, clamped to 64 MiB so the same limit is physical-VMEM
    # safe on v7x (64 MiB/TC) as well as v5e/v6e (128 MiB).
    return int(min(max(2 * est_bytes, 32 << 20), 64 << 20))


def _pick_tile(n, hfp, heads, fin, budget=40 << 20):
    """Largest dst-row tile whose attention-pass footprint fits the budget."""
    # TODO(synk): for N large enough that the resident bf16 xW alone exceeds
    # the budget, add a src-column grid axis with flash-style online softmax.
    cands = [t for t in (512, 256, 128) if t < n and n % t == 0]
    for t in cands:                       # biggest first (amortize grid overhead)
        if _attn_vmem_bytes(n, t, hfp, heads, fin) <= budget:
            return t
    if cands:
        return cands[-1]                  # smallest gridable tile (v7x 64 MiB case)
    return n                              # small graph: single full-array block


# --------------------------- pallas_call wrappers ---------------------------
def _gat_project(x, w_p, asrc_bdt, *, tile, vmem_limit):
    n, fin = x.shape
    hfp = w_p.shape[1]
    heads = asrc_bdt.shape[0]
    return pl.pallas_call(
        gat_project_kernel,
        out_shape=(jax.ShapeDtypeStruct((n, hfp), jnp.bfloat16),
                   jax.ShapeDtypeStruct((heads, n), jnp.float32)),
        grid=(n // tile,),
        in_specs=[pl.BlockSpec((tile, fin), lambda i: (i, 0)),    # x row tile
                  pl.BlockSpec((fin, hfp), lambda i: (0, 0)),     # W, resident
                  pl.BlockSpec((heads, hfp), lambda i: (0, 0))],  # att_src, resident
        out_specs=(pl.BlockSpec((tile, hfp), lambda i: (i, 0)),   # xW (bf16)
                   pl.BlockSpec((heads, tile), lambda i: (0, i))),  # alpha_srcT
        compiler_params=pltpu.CompilerParams(
            dimension_semantics=("parallel",),
            vmem_limit_bytes=vmem_limit),
    )(x, w_p, asrc_bdt)


def _gat_attention(adj_i8, xw, adst_bd, asrct, bias, *, heads, fo_p, tile,
                   vmem_limit, residual=None):
    n = adj_i8.shape[0]
    hfp = heads * fo_p
    # TODO(synk): mark the constant-index resident operands (xw, adst_bd,
    # asrct, bias, fc_w, fc_b) with pipeline_mode=pl.Buffered(1) to avoid
    # double-buffering buffers that never change across the grid.
    in_specs = [
        pl.BlockSpec((tile, n), lambda i: (i, 0)),        # int8 adj row tile
        pl.BlockSpec((n, hfp), lambda i: (0, 0)),         # bf16 xW, resident
        pl.BlockSpec((hfp, heads), lambda i: (0, 0)),     # att_dst block-diag
        pl.BlockSpec((heads, n), lambda i: (0, 0)),       # alpha_srcT, resident
        pl.BlockSpec((1, hfp), lambda i: (0, 0)),         # bias, resident
    ]
    args = [adj_i8, xw, adst_bd, asrct, bias]
    if residual is None:
        kern = functools.partial(gat_layer_kernel, heads, fo_p, tile)
    else:
        x_res, fc_w, fc_b = residual
        fin = x_res.shape[1]
        in_specs += [
            pl.BlockSpec((tile, fin), lambda i: (i, 0)),  # x tile for fc residual
            pl.BlockSpec((fin, hfp), lambda i: (0, 0)),   # fc weight, resident
            pl.BlockSpec((1, hfp), lambda i: (0, 0)),     # fc bias, resident
        ]
        args += [x_res, fc_w, fc_b]
        kern = functools.partial(gat_layer_res_kernel, heads, fo_p, tile)
    return pl.pallas_call(
        kern,
        out_shape=jax.ShapeDtypeStruct((n, hfp), jnp.float32),
        grid=(n // tile,),
        in_specs=in_specs,
        out_specs=pl.BlockSpec((tile, hfp), lambda i: (i, 0)),
        compiler_params=pltpu.CompilerParams(
            # Independent dst tiles -> splittable across TensorCores (v7x).
            dimension_semantics=("parallel",),
            vmem_limit_bytes=vmem_limit),
    )(*args)


# --------------------------- padding / packing helpers ----------------------
def _round_up(a, b):
    return -(-a // b) * b


def _padded_head_dim(fo, heads, lane=128):
    # Pads the CONCATENATED head dim (heads*fo) to a multiple of 128 so the big
    # xW / output tensors are lane-dense; per-head slots share the padding.
    total = _round_up(heads * fo, lane)
    while total % heads:
        total += lane
    return total // heads


def _pad_head_cols(m, heads, fo, fo_p):
    if fo_p == fo:
        return m
    pad = [(0, 0)] * (m.ndim - 1) + [(0, fo_p - fo)]
    return jnp.concatenate(
        [jnp.pad(m[..., h * fo:(h + 1) * fo], pad) for h in range(heads)],
        axis=-1)


def _pad_head_rows(m, heads, fi, fi_p):
    if fi_p == fi:
        return m
    return jnp.concatenate(
        [jnp.pad(m[h * fi:(h + 1) * fi, :], ((0, fi_p - fi), (0, 0)))
         for h in range(heads)], axis=0)


def _block_diag_att_t(att, fo_p):
    # att: [heads, fo] -> [heads, heads*fo_p]; row h holds att[h] in head-h slot.
    heads, fo = att.shape
    rows = []
    for h in range(heads):
        row = jnp.zeros((heads * fo_p,), att.dtype)
        row = row.at[h * fo_p:h * fo_p + fo].set(att[h])
        rows.append(row)
    return jnp.stack(rows, axis=0)


# --------------------------- forward ----------------------------------------
def multigat_forward(x, adj, params, *, heads, hidden, out_ch, tile=None):
    n, in_ch = x.shape
    fh_p = _padded_head_dim(hidden, heads)     # per-head hidden slot
    fo_p = _padded_head_dim(out_ch, heads)     # per-head output slot
    hfp1, hfp2 = heads * fh_p, heads * fo_p

    if tile is None:
        tile = _pick_tile(n, max(hfp1, hfp2), heads, in_ch)
    assert n % tile == 0, (n, tile)
    # int8 adj tiling is (32,128); asrct writeback needs 128-lane tiles.
    assert tile == n or tile % 128 == 0, (n, tile)

    # Lane-pad every per-head feature block (total width multiple of 128).
    w1_p = _pad_head_cols(params["w1"], heads, hidden, fh_p)
    b1_p = _pad_head_cols(params["b1"], heads, hidden, fh_p)
    as1_t = _block_diag_att_t(params["as1"], fh_p)                 # [H, hfp1] f32
    ad1_bd = _block_diag_att_t(params["ad1"], fh_p).T.astype(jnp.bfloat16)

    w2_p = _pad_head_cols(
        _pad_head_rows(params["w2"], heads, hidden, fh_p), heads, out_ch, fo_p)
    b2_p = _pad_head_cols(params["b2"], heads, out_ch, fo_p)
    as2_t = _block_diag_att_t(params["as2"], fo_p)
    ad2_bd = _block_diag_att_t(params["ad2"], fo_p).T.astype(jnp.bfloat16)

    fcw_p = _pad_head_cols(params["fc_w"], heads, out_ch, fo_p)
    fcb_p = _pad_head_cols(params["fc_b"], heads, out_ch, fo_p)

    # adj as int8: 4x less HBM/DMA on the dominant [N, N] stream.
    adj_i8 = (adj > 0).astype(jnp.int8)

    v_proj1 = _vmem_limit(_proj_vmem_bytes(tile, in_ch, hfp1, heads))
    v_proj2 = _vmem_limit(_proj_vmem_bytes(tile, hfp1, hfp2, heads))
    v_attn1 = _vmem_limit(_attn_vmem_bytes(n, tile, hfp1, heads, 0))
    v_attn2 = _vmem_limit(_attn_vmem_bytes(n, tile, hfp2, heads, in_ch))

    # layer 1: x = relu(conv1(x, edge_index))
    xw1, asrct1 = _gat_project(x, w1_p, as1_t, tile=tile, vmem_limit=v_proj1)
    h1 = _gat_attention(adj_i8, xw1, ad1_bd, asrct1, b1_p,
                        heads=heads, fo_p=fh_p, tile=tile, vmem_limit=v_attn1)

    # layer 2: x = relu(convN(h1, edge_index) + fc(x))
    xw2, asrct2 = _gat_project(h1, w2_p, as2_t, tile=tile, vmem_limit=v_proj2)
    out_p = _gat_attention(adj_i8, xw2, ad2_bd, asrct2, b2_p,
                           heads=heads, fo_p=fo_p, tile=tile, vmem_limit=v_attn2,
                           residual=(x, fcw_p, fcb_p))

    # Strip the per-head lane padding -> [N, heads*out_ch].
    return jnp.concatenate(
        [out_p[:, h * fo_p:h * fo_p + out_ch] for h in range(heads)], axis=-1)


# ---------------- pure-JAX reference (dense GAT, eval mode) ----------------
def _gat_layer_ref(x, adj, w, a_src, a_dst, b, heads, fo):
    xw = x @ w
    outs = []
    for h in range(heads):
        xh = xw[:, h * fo:(h + 1) * fo]
        s = (xh @ a_dst[h])[:, None] + (xh @ a_src[h])[None, :]
        s = jnp.where(s >= 0.0, s, 0.2 * s)
        s = jnp.where(adj > 0.5, s, -1e30)
        attn = jax.nn.softmax(s, axis=-1)
        outs.append(attn @ xh)
    return jnp.concatenate(outs, axis=-1) + b


def multigat_ref(x, adj, p, *, heads, hidden, out_ch):
    res = x @ p["fc_w"] + p["fc_b"]
    h1 = jax.nn.relu(_gat_layer_ref(x, adj, p["w1"], p["as1"], p["ad1"],
                                    p["b1"], heads, hidden))
    h2 = _gat_layer_ref(h1, adj, p["w2"], p["as2"], p["ad2"], p["b2"],
                        heads, out_ch)
    return jax.nn.relu(h2 + res)


if __name__ == "__main__":
    # Small shapes consistent with MultiGAT(in_channels, hidden, out, heads, num_layers)
    N = 256             # nodes (exercises the 2-step "parallel" grid: tile=128)
    IN_CH = 8
    HIDDEN = 8
    OUT_CH = 8
    HEADS = 2
    # note: num_layers is unused by the reference forward pass.

    key = jax.random.PRNGKey(0)
    ks = jax.random.split(key, 12)

    x = jax.random.normal(ks[0], (N, IN_CH), jnp.float32)

    # edge_index [2, E]: bidirectional ring graph (src row 0, dst row 1)
    src = jnp.arange(N, dtype=jnp.int32)
    dst = (src + 1) % N
    edge_index = jnp.stack([jnp.concatenate([src, dst]),
                            jnp.concatenate([dst, src])])     # [2, 2N]

    # dense adjacency mask adj[dst, src] = 1, plus self-loops (GATConv default)
    adj = jnp.zeros((N, N), jnp.float32)
    adj = adj.at[edge_index[1], edge_index[0]].set(1.0)
    adj = adj.at[jnp.arange(N), jnp.arange(N)].set(1.0)

    s = 0.2
    params = {
        # fc: Linear(in_channels, heads * out_channels)
        "fc_w": s * jax.random.normal(ks[1], (IN_CH, HEADS * OUT_CH), jnp.float32),
        "fc_b": s * jax.random.normal(ks[2], (1, HEADS * OUT_CH), jnp.float32),
        # conv1: GATConv(in_channels, hidden, heads=HEADS, concat=True, bias=True)
        "w1":  s * jax.random.normal(ks[3], (IN_CH, HEADS * HIDDEN), jnp.float32),
        "as1": s * jax.random.normal(ks[4], (HEADS, HIDDEN), jnp.float32),
        "ad1": s * jax.random.normal(ks[5], (HEADS, HIDDEN), jnp.float32),
        "b1":  s * jax.random.normal(ks[6], (1, HEADS * HIDDEN), jnp.float32),
        # convN: GATConv(hidden*heads, out_channels, heads=HEADS, concat=True)
        "w2":  s * jax.random.normal(ks[7], (HEADS * HIDDEN, HEADS * OUT_CH), jnp.float32),
        "as2": s * jax.random.normal(ks[8], (HEADS, OUT_CH), jnp.float32),
        "ad2": s * jax.random.normal(ks[9], (HEADS, OUT_CH), jnp.float32),
        "b2":  s * jax.random.normal(ks[10], (1, HEADS * OUT_CH), jnp.float32),
    }

    out = multigat_forward(x, adj, params,
                           heads=HEADS, hidden=HIDDEN, out_ch=OUT_CH)
    out = jax.block_until_ready(out)

    ref = multigat_ref(x, adj, params, heads=HEADS, hidden=HIDDEN, out_ch=OUT_CH)
    assert out.shape == (N, HEADS * OUT_CH)
    # Tolerance reflects bf16 xW storage + pl.reciprocal(approx=True) softmax
    # normalization; logits/accumulation stay f32.
    err = jnp.max(jnp.abs(out - ref))
    assert err < 5e-2, f"max abs err {err}"

    print("KERNEL_OK")
</pallas_src>

<mosaic_0001>
module attributes {stable_mosaic.version = 11 : i64} {
  func.func @gat_project_kernel(%arg0: i32, %arg1: memref<128x8xf32, #tpu.memory_space<vmem>>, %arg2: memref<8x128xf32, #tpu.memory_space<vmem>>, %arg3: memref<2x128xf32, #tpu.memory_space<vmem>>, %arg4: memref<128x128xbf16, #tpu.memory_space<vmem>>, %arg5: memref<2x128xf32, #tpu.memory_space<vmem>>) attributes {dimension_semantics = [#tpu.dimension_semantics<parallel>], iteration_bounds = array<i64: 2>, scalar_prefetch = 0 : i64, scratch_operands = 0 : i64, tpu.core_type = #tpu.core_type<tc>, window_params = [{transform_indices = @transform_0, window_bounds = array<i64: 128, 8>}, {pipeline_mode = #tpu.pipeline_mode<synchronous>, transform_indices = @transform_1, window_bounds = array<i64: 8, 128>}, {pipeline_mode = #tpu.pipeline_mode<synchronous>, transform_indices = @transform_2, window_bounds = array<i64: 2, 128>}, {transform_indices = @transform_3, window_bounds = array<i64: 128, 128>}, {transform_indices = @transform_4, window_bounds = array<i64: 2, 128>}]} {
    %c0 = arith.constant 0 : index
    %c0_0 = arith.constant 0 : index
    %0 = vector.load %arg1[%c0, %c0_0] : memref<128x8xf32, #tpu.memory_space<vmem>>, vector<128x8xf32>
    %c0_1 = arith.constant 0 : index
    %c0_2 = arith.constant 0 : index
    %1 = vector.load %arg2[%c0_1, %c0_2] : memref<8x128xf32, #tpu.memory_space<vmem>>, vector<8x128xf32>
    %cst = arith.constant dense<0.000000e+00> : vector<128x128xf32>
    %2 = tpu.matmul %0, %1, %cst {dimension_numbers = #tpu.dot_dimension_numbers<[1], [0], [0], [1], [0, 0, 1, 1], [], []>} : vector<128x8xf32>, vector<8x128xf32>, vector<128x128xf32> -> vector<128x128xf32>
    %3 = arith.truncf %2 : vector<128x128xf32> to vector<128x128xbf16>
    %c0_3 = arith.constant 0 : index
    %c0_4 = arith.constant 0 : index
    %4 = vector.load %arg4[%c0_3, %c0_4] : memref<128x128xbf16, #tpu.memory_space<vmem>>, vector<128x128xbf16>
    tpu.vector_store %arg4[%c0_3, %c0_4], %3 {strides = array<i32>} : memref<128x128xbf16, #tpu.memory_space<vmem>>, vector<128x128xbf16>,
    %c0_5 = arith.constant 0 : index
    %c0_6 = arith.constant 0 : index
    %5 = vector.load %arg3[%c0_5, %c0_6] : memref<2x128xf32, #tpu.memory_space<vmem>>, vector<2x128xf32>
    %cst_7 = arith.constant dense<0.000000e+00> : vector<2x128xf32>
    %6 = tpu.matmul %5, %2, %cst_7 {dimension_numbers = #tpu.dot_dimension_numbers<[1], [1], [0], [0], [0, 0, 1, 0], [], []>} : vector<2x128xf32>, vector<128x128xf32>, vector<2x128xf32> -> vector<2x128xf32>
    %c0_8 = arith.constant 0 : index
    %c0_9 = arith.constant 0 : index
    %7 = vector.load %arg5[%c0_8, %c0_9] : memref<2x128xf32, #tpu.memory_space<vmem>>, vector<2x128xf32>
    tpu.vector_store %arg5[%c0_8, %c0_9], %6 {strides = array<i32>} : memref<2x128xf32, #tpu.memory_space<vmem>>, vector<2x128xf32>,
    return
  }
  func.func @transform_0(%arg0: i32) -> (i32, i32) {
    %c0_i32 = arith.constant 0 : i32
    %c0_i32_0 = arith.constant 0 : i32
    return %arg0, %c0_i32 : i32, i32
  }
  func.func @transform_1(%arg0: i32) -> (i32, i32) {
    %c0_i32 = arith.constant 0 : i32
    %c0_i32_0 = arith.constant 0 : i32
    %c0_i32_1 = arith.constant 0 : i32
    return %c0_i32, %c0_i32_0 : i32, i32
  }
  func.func @transform_2(%arg0: i32) -> (i32, i32) {
    %c0_i32 = arith.constant 0 : i32
    %c0_i32_0 = arith.constant 0 : i32
    %c0_i32_1 = arith.constant 0 : i32
    return %c0_i32, %c0_i32_0 : i32, i32
  }
  func.func @transform_3(%arg0: i32) -> (i32, i32) {
    %c0_i32 = arith.constant 0 : i32
    %c0_i32_0 = arith.constant 0 : i32
    return %arg0, %c0_i32 : i32, i32
  }
  func.func @transform_4(%arg0: i32) -> (i32, i32) {
    %c0_i32 = arith.constant 0 : i32
    %c0_i32_0 = arith.constant 0 : i32
    return %c0_i32, %arg0 : i32, i32
  }
}

</mosaic_0001>

<bundles_post_ra>
// kernel: tpu_custom_call.1
= control target key start
LH: loop header
LB: loop body
LE: loop exit
PB: predicated region body
PF: predicated region fallthrough
CT: control target
= control target key end

     0   :  { %10 = vsyncpa [#allocation3], 0  ;;  %s1293_s0 = inlined_call_operand.vmem [shape: f32[256,8], index: 0, kind: input, shape index: {}]   ;;  %s1294_s1 = inlined_call_operand.vmem [shape: f32[8,128], index: 1, kind: input, shape index: {}]   ;;  %s1295_s2 = inlined_call_operand.vmem [shape: f32[2,128], index: 2, kind: input, shape index: {}]   ;;  %s1296_s3 = inlined_call_operand.hbm [shape: bf16[256,128], index: 3, kind: output, shape index: {0}]   ;;  %s1297_s4 = inlined_call_operand.hbm [shape: f32[2,256], index: 4, kind: output, shape index: {1}]  }
   0x1   :  { %12 = vsyncpa [#allocation3 + $0x1], 0 }
   0x2   :  { %13 = vsyncpa [#allocation5], 0 }
   0x3   :  { %15 = vsyncpa [#allocation5 + $0x1], 0  ;;  %s1106_s15 = smov 0   ;;  %s1108_s16 = smov 0  }
   0x4   :  { %s1110_s17 = smov 0   ;;  %s1112_s18 = smov 0  }
   0x5 LB: > { %s1127_s19 = sadd.s32 4294967295, %s1072_s18   ;;  %s699_s20 = sadd.s32 4294967294, %s1072_s18   ;;  %s1072_s18 = sphi %s1112_s18, %s1303_s18   ;;  %s1068_s17 = sphi %s1110_s17, %s1302_s17   ;;  %s1064_s16 = sphi %s1108_s16, %s1301_s16   ;;  %s1060_s15 = sphi %s1106_s15, %s1300_s15  }
   0x6   : > { %s1131_s21 = sadd.s32 1, %s1072_s18   ;;  %s96_s22 = sadd.s32 1, %s1068_s17 }
   0x7   : > { %s93_s23 = ssub.s32 %s1072_s18, %s1131_s21  ;;  %p106_p0 = scmp.ne.s32.totalorder %s1068_s17, %s1064_s16 }
   0x8   : > { %p94_p1 = scmp.eq.s32.totalorder %s93_s23, 0  ;;  %p107_p2 = scmp.eq.s32.totalorder %s1127_s19, 1 }
   0x9   : > { %p112_p3 = scmp.ne.s32.totalorder %s1064_s16, %s1060_s15  ;;  %p113_p4 = scmp.eq.s32.totalorder %s699_s20, 1 }
   0xa   : > { %s1142_s24 = scalar_select %p94_p1, %s1068_s17, %s96_s22  }
   0xb   : > { %p1144_p5 = por %p107_p2, %p106_p0  ;;  %p1148_p6 = por %p113_p4, %p112_p3 }
   0xc   : > { %p702_p7 = scmp.ge.s32.totalorder %s1072_s18, 1  ;;  %p172_p8 = scmp.lt.s32.totalorder %s1072_s18, 3 }
   0xe   : > { %p173_p9 = pnand %p702_p7, %p172_p8 }
   0xf   : > { %v226_v0 = vld [vmem:[%s1294_s1] sm:$0xff] (!%p173_p9)  ;;  %s705_s29 = sshll.u32 (!%p173_p9), %s1127_s19, 4  ;;  %vm227_vm0 = vcmask (!%p173_p9), 64512   ;;  %v1074_v17 = vmov (!%p173_p9), 0.0|0.0   ;;  %vm1075_vm1 = vmmov (!%p173_p9), 0   ;;  %v1076_v18 = vmov (!%p173_p9), 0.0  }
  0x10   : > { %176 = sbr.rel (%p173_p9) target bundleno = 532 (0x214), region = 32  ;;  %844 = vmatprep.subr.mxu0 (!%p173_p9), %v226_v0  ;;  %p204_p10 = scmp.lt.s32.totalorder (!%p173_p9), %s705_s29, 31  ;;  %905 = vmatprep.subr.bf16.mxu1 (!%p173_p9), %v1074_v17  ;;  %v501_v43 = vld [vmem:[%s1295_s2] sm:$0x3] (!%p173_p9) }
  0x11   : > { %845 = vmatpush3.msra.mxu0 (!%p173_p9), %v226_v0  ;;  %902 = vmatprep.mubr.msk.f32.mxu1 (!%p173_p9), %vm1075_vm1, %v1076_v18  ;;  %s1196_s8 = sand.u32 (!%p173_p9), 1, %s1064_s16   ;;  %s762_s13 = sshll.u32 (!%p173_p9), %s1127_s19, 10 }
  0x12   : > { %s703_s9 = sshll.u32 (!%p173_p9), %s1196_s8, 6  ;;  %s1216_s22 = scalar_lea.hbm (!%p173_p9), %s1296_s3, %s762_s13 }
  0x13   : > { %s1199_s10 = scalar_lea.vmem (!%p173_p9), [#allocation2], %s703_s9  ;;  %s574_s27 = scalar_lea.sflag (!%p173_p9), [#allocation3], %s1196_s8 }
  0x14   : > { %s592_s23 = sshll.u32 (!%p173_p9), %s1199_s10, 4  ;;  %s1219_s23 = int_to_ptr.vmem [resolvable:$true] %s592_s23 }
  0x15   : > { %s978_s28 = scalar_lea.vmem (!%p173_p9), %s1219_s23, 1024 }
  0x16   : > { %p979_p11 = scmp.ne.s32.totalorder (!%p173_p9), %s1219_s23, %s978_s28 }
  0x17   : > { %s1305_s29 = smov (!%p204_p10, %s705_s29), 31 }
  0x18   : > { %s706_s30 = sshll.u32 %s1305_s29, 3  ;;  %p980_p12 = pnand %p979_p11, %p1144_p5 }
  0x19   : > { %s1161_s7 = scalar_lea.vmem %s1293_s0, %s706_s30  ;;  %s1077_s29 = smov [#allocation2]  }
  0x1a   : > { %v210_v1 = vld [vmem:[%s1161_s7] sm:$0xff]  ;;  %v211_v2 = vld [vmem:[%s1161_s7 + $0x8] sm:$0xff]  ;;  %v212_v3 = vld [vmem:[%s1161_s7 + $0x10] sm:$0xff]  ;;  %p981_p13 = pneg %p980_p12  ;;  %s982_s30 = sshll.u32 %s1077_s29, 4  ;;  %s983_s30 = int_to_ptr.vmem [resolvable:$false] %s982_s30 }
  0x1b   : > { %846 = vmatprep.mubr.msk.f32.mxu0 %vm227_vm0, %v210_v1  ;;  %v213_v4 = vld [vmem:[%s1161_s7 + $0x18] sm:$0xff]  ;;  %v214_v5 = vld [vmem:[%s1161_s7 + $0x20] sm:$0xff]  ;;  %v215_v6 = vld [vmem:[%s1161_s7 + $0x28] sm:$0xff]  ;;  %s984_s5 = scalar_lea.vmem %s983_s30, 2048  ;;  %p985_p0 = scmp.lt.s32.totalorder %s1219_s23, %s983_s30 }
  0x1c   : > { %847 = vmatmul.mubr.msk.f32.vlgmr.msra.gmra.mrb[0].mxu0 %vm227_vm0, %v211_v2  ;;  %v216_v7 = vld [vmem:[%s1161_s7 + $0x30] sm:$0xff]  ;;  %v217_v8 = vld [vmem:[%s1161_s7 + $0x38] sm:$0xff]  ;;  %v218_v9 = vld [vmem:[%s1161_s7 + $0x40] sm:$0xff]  ;;  %p986_p1 = scmp.lt.s32.totalorder %s984_s5, %s978_s28 }
  0x1d   : > { %849 = vmatprep.mubr.msk.f32.mxu0 %vm227_vm0, %v212_v3  ;;  %v219_v10 = vld [vmem:[%s1161_s7 + $0x48] sm:$0xff]  ;;  %v220_v11 = vld [vmem:[%s1161_s7 + $0x50] sm:$0xff]  ;;  %v221_v12 = vld [vmem:[%s1161_s7 + $0x58] sm:$0xff] }
  0x1e   : > { %v222_v13 = vld [vmem:[%s1161_s7 + $0x60] sm:$0xff]  ;;  %v223_v14 = vld [vmem:[%s1161_s7 + $0x68] sm:$0xff]  ;;  %v224_v15 = vld [vmem:[%s1161_s7 + $0x70] sm:$0xff]  ;;  %p987_p2 = por %p986_p1, %p985_p0 }
  0x1f   : > { %v225_v16 = vld [vmem:[%s1161_s7 + $0x78] sm:$0xff] }
  0x20   : > { %850 = vmatmul.mubr.msk.f32.gmra.mrb[2].mxu0 %vm227_vm0, %v213_v4  ;;  %p988_p3 = pnand %p987_p2, %p981_p13 }
  0x21   : > { %852 = vmatprep.mubr.msk.f32.mxu0 %vm227_vm0, %v214_v5 }
  0x24   : > { %853 = vmatmul.mubr.msk.f32.gmra.mrb[4].mxu0 %vm227_vm0, %v215_v6 }
  0x25   : > { %855 = vmatprep.mubr.msk.f32.mxu0 %vm227_vm0, %v216_v7 }
  0x28   : > { %856 = vmatmul.mubr.msk.f32.gmra.mrb[6].mxu0 %vm227_vm0, %v217_v8 }
  0x29   : > { %858 = vmatprep.mubr.msk.f32.mxu0 %vm227_vm0, %v218_v9 }
  0x2c   : > { %859 = vmatmul.mubr.msk.f32.gmra.mrb[8].mxu0 %vm227_vm0, %v219_v10 }
  0x2d   : > { %861 = vmatprep.mubr.msk.f32.mxu0 %vm227_vm0, %v220_v11 }
  0x30   : > { %862 = vmatmul.mubr.msk.f32.gmra.mrb[10].mxu0 %vm227_vm0, %v221_v12 }
  0x31   : > { %864 = vmatprep.mubr.msk.f32.mxu0 %vm227_vm0, %v222_v13 }
  0x34   : > { %865 = vmatmul.mubr.msk.f32.gmra.mrb[12].mxu0 %vm227_vm0, %v223_v14 }
  0x35   : > { %867 = vmatprep.mubr.msk.f32.mxu0 %vm227_vm0, %v224_v15 }
  0x38   : > { %868 = vmatmul.mubr.msk.f32.gmra.mrb[14].mxu0 %vm227_vm0, %v225_v16 }
  0xef   : > { %v848_v19 = vpop.f32.mrb[0].mxu0 }
  0xf0   : > { %v342_v20 = vpop.f32.mrb[1].mxu0 }
  0xf1   : > { %v766_v21 = vpack.c.bf16 %v848_v19, %v342_v20 }
  0xf3   : > { %767 = vst [vmem:[%s1199_s10] sm:$0xff] %v766_v21   ;;  %907 = vmatpush3.bf16.xpose.msra.mxu1 %v766_v21  ;;  %v851_v22 = vpop.f32.mrb[2].mxu0 }
  0xf4   : > { %v352_v23 = vpop.f32.mrb[3].mxu0  ;;  %908 = vmatprep.subr.bf16.mxu1 %v1074_v17 }
  0xf5   : > { %v771_v24 = vpack.c.bf16 %v851_v22, %v352_v23 }
  0xf7   : > { %803 = vst [vmem:[%s1199_s10 + $0x8] sm:$0xff] %v771_v24   ;;  %v854_v25 = vpop.f32.mrb[4].mxu0 }
  0xf8   : > { %v362_v26 = vpop.f32.mrb[5].mxu0 }
  0xf9   : > { %v776_v27 = vpack.c.bf16 %v854_v25, %v362_v26 }
  0xfb   : > { %910 = vmatpush3.bf16.xpose.msra.mxu1 %v771_v24  ;;  %804 = vst [vmem:[%s1199_s10 + $0x10] sm:$0xff] %v776_v27   ;;  %v857_v28 = vpop.f32.mrb[6].mxu0 }
  0xfc   : > { %911 = vmatprep.subr.bf16.mxu1 %v1074_v17  ;;  %v372_v29 = vpop.f32.mrb[7].mxu0 }
  0xfd   : > { %v781_v30 = vpack.c.bf16 %v857_v28, %v372_v29 }
  0xff   : > { %805 = vst [vmem:[%s1199_s10 + $0x18] sm:$0xff] %v781_v30   ;;  %v860_v31 = vpop.f32.mrb[8].mxu0 }
 0x100   : > { %v382_v32 = vpop.f32.mrb[9].mxu0 }
 0x101   : > { %v786_v33 = vpack.c.bf16 %v860_v31, %v382_v32 }
 0x103   : > { %913 = vmatpush3.bf16.xpose.msra.mxu1 %v776_v27  ;;  %806 = vst [vmem:[%s1199_s10 + $0x20] sm:$0xff] %v786_v33   ;;  %v863_v34 = vpop.f32.mrb[10].mxu0 }
 0x104   : > { %914 = vmatprep.subr.bf16.mxu1 %v1074_v17  ;;  %v392_v35 = vpop.f32.mrb[11].mxu0 }
 0x105   : > { %v791_v36 = vpack.c.bf16 %v863_v34, %v392_v35 }
 0x107   : > { %807 = vst [vmem:[%s1199_s10 + $0x28] sm:$0xff] %v791_v36   ;;  %v866_v37 = vpop.f32.mrb[12].mxu0 }
 0x108   : > { %v402_v38 = vpop.f32.mrb[13].mxu0 }
 0x109   : > { %v796_v39 = vpack.c.bf16 %v866_v37, %v402_v38 }
 0x10b   : > { %916 = vmatpush3.bf16.xpose.msra.mxu1 %v781_v30  ;;  %808 = vst [vmem:[%s1199_s10 + $0x30] sm:$0xff] %v796_v39   ;;  %v869_v40 = vpop.f32.mrb[14].mxu0 }
 0x10c   : > { %917 = vmatprep.subr.bf16.mxu1 %v1074_v17  ;;  %v412_v41 = vpop.f32.mrb[15].mxu0 }
 0x10d   : > { %v801_v42 = vpack.c.bf16 %v869_v40, %v412_v41 }
 0x10f   : > { %809 = vst [vmem:[%s1199_s10 + $0x38] sm:$0xff] %v801_v42  }
 0x113   : > { %919 = vmatpush3.bf16.xpose.msra.mxu1 %v786_v33 }
 0x114   : > { %920 = vmatprep.subr.bf16.mxu1 %v1074_v17 }
 0x11b   : > { %922 = vmatpush3.bf16.xpose.msra.mxu1 %v791_v36 }
 0x11c   : > { %923 = vmatprep.subr.bf16.mxu1 %v1074_v17 }
 0x123   : > { %925 = vmatpush3.bf16.xpose.msra.mxu1 %v796_v39 }
 0x124   : > { %926 = vmatprep.subr.bf16.mxu1 %v1074_v17 }
 0x12b   : > { %928 = vmatpush3.bf16.xpose.msra.mxu1 %v801_v42 }
 0x132   : > { %903 = vmatmul.mubr.f32.vlgmr.msra.gmra.mrb[0].mxu1 %v501_v43 }
 0x133   : > { %991 = shalt.err (!%p988_p3)
}
 0x134   : > { %s992_s6 = scalar_lea.hbm %s1216_s22, 1024  ;;  %s996_s10 = scalar_lea.hbm %s1296_s3, 2048 }
 0x135   : > { %p993_p4 = scmp.ne.s32.totalorder %s1216_s22, %s992_s6  ;;  %p997_p9 = scmp.lt.u32.totalorder %s1216_s22, %s1296_s3 }
 0x136   : > { %p998_p10 = scmp.lt.u32.totalorder %s996_s10, %s992_s6  ;;  %p1000_p12 = scmp.lt.u32.totalorder %s992_s6, %s1216_s22 }
 0x137   : > { %p994_p7 = pnand %p993_p4, %p1144_p5 }
 0x138   : > { %p999_p11 = por %p998_p10, %p997_p9 }
 0x139   : > { %p995_p8 = pneg %p994_p7 }
 0x13a   : > { %p1001_p13 = por %p1000_p12, %p999_p11 }
 0x13c   : > { %p1002_p0 = pnand %p1001_p13, %p995_p8 }
 0x13e   : > { %1005 = shalt.err (!%p1002_p0)
}
 0x13f   : > { %s1078_s13 = smov 64   ;;  %s1079_s14 = smov 4  }
 0x140   : > { %929 = dma.vmem_to_hbm [thread:$0]  (%p1144_p5), %s1219_s23, 1024, %s1216_s22, %s574_s27, %s1078_s13, %s1078_s13, %s1079_s14  }
 0x141   : > { %s704_s20 = sshll.u32 %s1196_s8, 1  ;;  %s743_s30 = sshll.u32 %s1127_s19, 5 }
 0x142   : > { %s202_s28 = scalar_lea.vmem [#allocation4], %s704_s20  ;;  %s1252_s7 = scalar_lea.hbm %s1297_s4, %s743_s30 }
 0x143   : > { %s608_s29 = sshll.u32 %s202_s28, 4  ;;  %s579_s9 = scalar_lea.sflag [#allocation5], %s1196_s8  ;;  %s1247_s29 = int_to_ptr.vmem [resolvable:$true] %s608_s29 }
 0x144   : > { %s1006_s10 = scalar_lea.vmem %s1247_s29, 32  ;;  %s1080_s19 = smov [#allocation4]  }
 0x145   : > { %p1007_p1 = scmp.ne.s32.totalorder %s1247_s29, %s1006_s10  ;;  %s1010_s22 = sshll.u32 %s1080_s19, 4  ;;  %s1011_s22 = int_to_ptr.vmem [resolvable:$false] %s1010_s22 }
 0x146   : > { %s1012_s23 = scalar_lea.vmem %s1011_s22, 64  ;;  %p1013_p4 = scmp.lt.s32.totalorder %s1247_s29, %s1011_s22 }
 0x147   : > { %p1008_p2 = pnand %p1007_p1, %p1144_p5  ;;  %p1014_p7 = scmp.lt.s32.totalorder %s1012_s23, %s1006_s10 }
 0x149   : > { %p1009_p3 = pneg %p1008_p2  ;;  %p1015_p8 = por %p1014_p7, %p1013_p4 }
 0x14b   : > { %p1016_p9 = pnand %p1015_p8, %p1009_p3 }
 0x205   : > { %v568_v44 = vpop.f32.mrb[0].mxu1 }
 0x206   : > { %572 = vst [vmem:[%s202_s28] sm:$0x3] %v568_v44  ;;  %v904_v45 = vpop.f32.mrb[1].mxu1 }
 0x207   : > { %1019 = shalt.err (!%p1016_p9)
}
 0x208   : > { %s1020_s8 = scalar_lea.hbm %s1252_s7, 32  ;;  %s1024_s12 = scalar_lea.hbm %s1297_s4, 64 }
 0x209   : > { %p1021_p10 = scmp.ne.s32.totalorder %s1252_s7, %s1020_s8  ;;  %p1025_p13 = scmp.lt.u32.totalorder %s1252_s7, %s1297_s4 }
 0x20a   : > { %p1026_p0 = scmp.lt.u32.totalorder %s1024_s12, %s1020_s8  ;;  %p1028_p2 = scmp.lt.u32.totalorder %s1020_s8, %s1252_s7 }
 0x20b   : > { %p1022_p11 = pnand %p1021_p10, %p1144_p5 }
 0x20c   : > { %p1027_p1 = por %p1026_p0, %p1025_p13 }
 0x20d   : > { %p1023_p12 = pneg %p1022_p11 }
 0x20e   : > { %p1029_p3 = por %p1028_p2, %p1027_p1 }
 0x210   : > { %p1030_p4 = pnand %p1029_p3, %p1023_p12 }
 0x212   : > { %1033 = shalt.err (!%p1030_p4)
}
 0x213   : > { %930 = dma.vmem_to_hbm [thread:$0]  (%p1144_p5), %s1247_s29, 32, %s1252_s7, %s579_s9  }
 0x214 PF: > { %p940_p7 = scmp.ge.s32.totalorder %s1072_s18, 2  ;;  %s620_s20 = sand.u32 1, %s1060_s15  }
 0x215   : > { %s621_s28 = scalar_lea.sflag [#allocation3], %s620_s20 }
 0x216   : > { %p934_p8 = pnand %p940_p7, %p1148_p6 }
 0x218   : > { %1051 = dma.done.wait (!%p934_p8), %s621_s28, 1024  }
 0x219   : > { %1053 = vsyncadd (!%p934_p8), %s621_s28, 4294966272  ;;  %s630_s30 = scalar_lea.sflag [#allocation5], %s620_s20 }
 0x21a   : > { %1055 = dma.done.wait (!%p934_p8), %s630_s30, 32  }
 0x21b   : > { %1057 = vsyncadd (!%p934_p8), %s630_s30, 4294967264  ;;  %p18_p5 = scmp.ge.s32.totalorder %s1131_s21, 4   ;;  %s1300_s15 = smov %s1064_s16 }
 0x21c   : > { %s1301_s16 = smov %s1068_s17  ;;  %s1302_s17 = smov %s1142_s24 }
 0x21d   : > { %s1303_s18 = smov %s1131_s21  ;;  %20 = sbr.rel (!%p18_p5) target bundleno = 5 (0x5), region = 84 }
 0x224   :  { %635 = vsyncpa [#allocation3], 1 }
 0x225   :  { %637 = vsyncpa [#allocation3 + $0x1], 1 }
 0x226   :  { %638 = vsyncpa [#allocation5], 1 }
 0x227   :  { %640 = vsyncpa [#allocation5 + $0x1], 1 }

</bundles_post_ra>
